<compile_context>
chip_gen: v7x
topology: tpu7x:2x2x1
jax: 0.10.0
libtpu: 0.0.40
codegen_flags: <defaults>
</compile_context>

<pallas_src>
import jax
import jax.numpy as jnp
from jax.experimental import pallas as pl
from jax.experimental.pallas import tpu as pltpu


# --------------------------------------------------------------------- kernel

def _rnn_seq_kernel(
    x_ref,        # (1, Bp, IN)   per-step [category ++ input] slice (streams over T)
    h0_ref,       # (Bp, H)       initial hidden (constant block index, fetched once)
    w1x_ref,      # (IN, H+O)     packed [W_i2h.T | W_i2o.T], rows for the x part
    w1h_ref,      # (H,  H+O)     packed rows for the hidden part
    b1_ref,       # (1,  H+O)     packed [b_i2h | b_i2o]
    w2_ref,       # (H+O, OP)     W_o2o.T, zero-padded to OP lanes
    b2_ref,       # (1,  OP)      b_o2o, padded lanes hold a large-negative bias
    out_ref,      # (1, Bp, OP)   per-step log-softmax output
    h_final_ref,  # (Bp, H)       final hidden (constant block index)
    h_carry,      # (Bp, H) VMEM  hidden carry, resident across all T steps
):
    t = pl.program_id(0)
    H = h_carry.shape[-1]

    @pl.when(t == 0)
    def _():
        h_carry[...] = h0_ref[...]

    x = x_ref[0]                 # (Bp, IN)
    h_prev = h_carry[...]        # (Bp, H)

    # fused == cat(input_to_hidden(x_comb), input_to_output(x_comb))
    #        == the module's `output_combined`, with both biases folded in.
    fused = (
        jnp.dot(x, w1x_ref[...], preferred_element_type=jnp.float32)
        + jnp.dot(h_prev, w1h_ref[...], preferred_element_type=jnp.float32)
        + b1_ref[...]
    )
    h_new = fused[:, :H]
    h_carry[...] = h_new

    # output_to_output(output_combined)
    logits = jnp.dot(fused, w2_ref[...], preferred_element_type=jnp.float32) + b2_ref[...]

    # dropout(p=0.1) is identity in eval mode.
    # TODO(synk): training-mode dropout (stochastic mask) intentionally omitted.

    # LogSoftmax(dim=1). Padded lanes carry a -3e4 bias -> exp underflows to 0,
    # so they never contribute to the normalizer.
    m = jnp.max(logits, axis=-1, keepdims=True)
    shifted = logits - m
    lse = jnp.log(jnp.sum(jnp.exp(shifted), axis=-1, keepdims=True))
    out_ref[0] = shifted - lse

    @pl.when(t == pl.num_programs(0) - 1)
    def _():
        h_final_ref[...] = h_new


# ------------------------------------------------------------------- wrappers

def pack_params(params):
    """One-time weight packing / transposition (never redone per step)."""
    H, C = params["w_i2h"].shape            # (H, num_cat + input_size + H)
    O = params["w_i2o"].shape[0]
    IN = C - H                              # num_categories + input_size
    OP = ((O + 127) // 128) * 128           # lane-dense output width

    w1 = jnp.concatenate([params["w_i2h"].T, params["w_i2o"].T], axis=1)   # (C, H+O)
    return {
        "w1x": w1[:IN],                                                    # (IN, H+O)
        "w1h": w1[IN:],                                                    # (H,  H+O)
        "b1": jnp.concatenate([params["b_i2h"], params["b_i2o"]])[None],   # (1,  H+O)
        "w2": jnp.zeros((H + O, OP), jnp.float32).at[:, :O].set(params["w_o2o"].T),
        "b2": jnp.full((1, OP), -3e4, jnp.float32).at[0, :O].set(params["b_o2o"]),
    }


@jax.jit
def rnn_sequence_forward(packed, category_vec, x_seq, hidden0):
    """Run the whole recurrence in ONE pallas_call.

    x_seq:        (T, B, input_size)
    category_vec: (B, num_categories)   (constant over the sequence)
    hidden0:      (B, H)
    returns:      (log_probs (T, B, O), final_hidden (B, H))
    """
    T, B, _ = x_seq.shape
    H = hidden0.shape[1]
    IN = packed["w1x"].shape[0]
    HO = packed["w1x"].shape[1]
    OP = packed["w2"].shape[1]
    O = HO - H

    # [category ++ input] built once for the whole sequence (no per-step concat).
    cat_seq = jnp.broadcast_to(category_vec[None], (T, B, category_vec.shape[1]))
    x_cat = jnp.concatenate([cat_seq, x_seq], axis=2)            # (T, B, IN)

    # Pad batch to a full sublane tile (once per sequence).
    Bp = max(8, -(-B // 8) * 8)
    x_cat = jnp.pad(x_cat, ((0, 0), (0, Bp - B), (0, 0)))
    h0 = jnp.pad(hidden0, ((0, Bp - B), (0, 0)))

    out_seq, h_final = pl.pallas_call(
        _rnn_seq_kernel,
        out_shape=(
            jax.ShapeDtypeStruct((T, Bp, OP), jnp.float32),
            jax.ShapeDtypeStruct((Bp, H), jnp.float32),
        ),
        grid=(T,),
        in_specs=[
            pl.BlockSpec((1, Bp, IN), lambda t: (t, 0, 0)),  # only this streams per step
            pl.BlockSpec((Bp, H), lambda t: (0, 0)),         # everything below: fetched
            pl.BlockSpec((IN, HO), lambda t: (0, 0)),        # once, resident in VMEM
            pl.BlockSpec((H, HO), lambda t: (0, 0)),
            pl.BlockSpec((1, HO), lambda t: (0, 0)),
            pl.BlockSpec((HO, OP), lambda t: (0, 0)),
            pl.BlockSpec((1, OP), lambda t: (0, 0)),
        ],
        out_specs=(
            pl.BlockSpec((1, Bp, OP), lambda t: (t, 0, 0)),
            pl.BlockSpec((Bp, H), lambda t: (0, 0)),
        ),
        scratch_shapes=[pltpu.VMEM((Bp, H), jnp.float32)],
        compiler_params=pltpu.CompilerParams(
            dimension_semantics=("arbitrary",)),             # recurrence is sequential
    )(x_cat, h0, packed["w1x"], packed["w1h"], packed["b1"],
      packed["w2"], packed["b2"])

    return out_seq[:, :B, :O], h_final[:B]


def rnn_forward(packed, category_vec, input_vec, hidden):
    """One step, matching the PyTorch RNN.forward(category_vec, input_vec, hidden)."""
    out_seq, h_new = rnn_sequence_forward(packed, category_vec, input_vec[None], hidden)
    return out_seq[0], h_new


def init_params(key, num_categories, input_size, hidden_size, output_size):
    C = num_categories + input_size + hidden_size
    ks = jax.random.split(key, 6)

    def linear_init(kw, kb, fan_in, fan_out):
        bound = 1.0 / jnp.sqrt(fan_in)
        w = jax.random.uniform(kw, (fan_out, fan_in), jnp.float32, -bound, bound)
        b = jax.random.uniform(kb, (fan_out,), jnp.float32, -bound, bound)
        return w, b

    w_i2h, b_i2h = linear_init(ks[0], ks[1], C, hidden_size)
    w_i2o, b_i2o = linear_init(ks[2], ks[3], C, output_size)
    w_o2o, b_o2o = linear_init(ks[4], ks[5], hidden_size + output_size, output_size)
    return {
        "w_i2h": w_i2h, "b_i2h": b_i2h,
        "w_i2o": w_i2o, "b_i2o": b_i2o,
        "w_o2o": w_o2o, "b_o2o": b_o2o,
    }


# Pure-JAX reference of the module's forward (for correctness checking).
def _rnn_step_ref(params, category_vec, input_vec, hidden):
    combined = jnp.concatenate([category_vec, input_vec, hidden], axis=1)
    h = combined @ params["w_i2h"].T + params["b_i2h"]
    o = combined @ params["w_i2o"].T + params["b_i2o"]
    o2 = jnp.concatenate([h, o], axis=1) @ params["w_o2o"].T + params["b_o2o"]
    return jax.nn.log_softmax(o2, axis=1), h


if __name__ == "__main__":
    num_categories = 0        # len(all_categories) in the reference script
    input_size = 16
    hidden_size = 32
    output_size = 18
    batch = 2
    seq_len = 8

    key = jax.random.PRNGKey(0)
    kp, kx = jax.random.split(key)

    params = init_params(kp, num_categories, input_size, hidden_size, output_size)
    packed = pack_params(params)     # one-time packing, reused for every sequence

    category_vec = jnp.zeros((batch, num_categories), jnp.float32)
    x_seq = jax.random.normal(kx, (seq_len, batch, input_size), jnp.float32)
    hidden0 = jnp.zeros((batch, hidden_size), jnp.float32)   # init_hidden()

    log_probs, h_final = rnn_sequence_forward(packed, category_vec, x_seq, hidden0)
    jax.block_until_ready((log_probs, h_final))

    # Reference: apply the module's forward step T times.
    h = hidden0
    refs = []
    for t in range(seq_len):
        o, h = _rnn_step_ref(params, category_vec, x_seq[t], h)
        refs.append(o)
    ref_out = jnp.stack(refs)

    assert log_probs.shape == (seq_len, batch, output_size)
    assert h_final.shape == (batch, hidden_size)
    assert bool(jnp.allclose(jnp.sum(jnp.exp(log_probs), axis=-1), 1.0, atol=1e-5))
    assert bool(jnp.allclose(log_probs, ref_out, atol=1e-4, rtol=1e-4))
    assert bool(jnp.allclose(h_final, h, atol=1e-4, rtol=1e-4))

    # Single-step call (module's forward signature) also works.
    step_out, step_h = rnn_forward(packed, category_vec, x_seq[0], hidden0)
    jax.block_until_ready((step_out, step_h))
    assert bool(jnp.allclose(step_out, ref_out[0], atol=1e-4, rtol=1e-4))

    print("KERNEL_OK")
</pallas_src>

<mosaic_0001>
module attributes {stable_mosaic.version = 11 : i64} {
  func.func @_rnn_seq_kernel(%arg0: i32, %arg1: memref<1x8x16xf32, #tpu.memory_space<vmem>>, %arg2: memref<8x32xf32, #tpu.memory_space<vmem>>, %arg3: memref<16x50xf32, #tpu.memory_space<vmem>>, %arg4: memref<32x50xf32, #tpu.memory_space<vmem>>, %arg5: memref<1x50xf32, #tpu.memory_space<vmem>>, %arg6: memref<50x128xf32, #tpu.memory_space<vmem>>, %arg7: memref<1x128xf32, #tpu.memory_space<vmem>>, %arg8: memref<1x8x128xf32, #tpu.memory_space<vmem>>, %arg9: memref<8x32xf32, #tpu.memory_space<vmem>>, %arg10: memref<8x32xf32, #tpu.memory_space<vmem>>) attributes {dimension_semantics = [#tpu.dimension_semantics<arbitrary>], iteration_bounds = array<i64: 8>, scalar_prefetch = 0 : i64, scratch_operands = 1 : i64, tpu.core_type = #tpu.core_type<tc>, window_params = [{transform_indices = @transform_0, window_bounds = array<i64: 1, 8, 16>}, {pipeline_mode = #tpu.pipeline_mode<synchronous>, transform_indices = @transform_1, window_bounds = array<i64: 8, 32>}, {pipeline_mode = #tpu.pipeline_mode<synchronous>, transform_indices = @transform_2, window_bounds = array<i64: 16, 50>}, {pipeline_mode = #tpu.pipeline_mode<synchronous>, transform_indices = @transform_3, window_bounds = array<i64: 32, 50>}, {pipeline_mode = #tpu.pipeline_mode<synchronous>, transform_indices = @transform_4, window_bounds = array<i64: 1, 50>}, {pipeline_mode = #tpu.pipeline_mode<synchronous>, transform_indices = @transform_5, window_bounds = array<i64: 50, 128>}, {pipeline_mode = #tpu.pipeline_mode<synchronous>, transform_indices = @transform_6, window_bounds = array<i64: 1, 128>}, {transform_indices = @transform_7, window_bounds = array<i64: 1, 8, 128>}, {pipeline_mode = #tpu.pipeline_mode<synchronous>, transform_indices = @transform_8, window_bounds = array<i64: 8, 32>}]} {
    %c0_i32 = arith.constant 0 : i32
    %0 = arith.cmpi eq, %arg0, %c0_i32 : i32
    %1 = arith.extui %0 : i1 to i32
    %c0_i32_0 = arith.constant 0 : i32
    %2 = arith.cmpi ne, %1, %c0_i32_0 : i32
    scf.if %2 {
      %c0_25 = arith.constant 0 : index
      %c0_26 = arith.constant 0 : index
      %37 = vector.load %arg2[%c0_25, %c0_26] : memref<8x32xf32, #tpu.memory_space<vmem>>, vector<8x32xf32>
      %c0_27 = arith.constant 0 : index
      %c0_28 = arith.constant 0 : index
      %38 = vector.load %arg10[%c0_27, %c0_28] : memref<8x32xf32, #tpu.memory_space<vmem>>, vector<8x32xf32>
      tpu.vector_store %arg10[%c0_27, %c0_28], %37 {strides = array<i32>} : memref<8x32xf32, #tpu.memory_space<vmem>>, vector<8x32xf32>,
    } else {
    }
    %c0 = arith.constant 0 : index
    %c0_1 = arith.constant 0 : index
    %c0_2 = arith.constant 0 : index
    %3 = vector.load %arg1[%c0, %c0_1, %c0_2] : memref<1x8x16xf32, #tpu.memory_space<vmem>>, vector<1x8x16xf32>
    %4 = vector.shape_cast %3 : vector<1x8x16xf32> to vector<8x16xf32>
    %c0_3 = arith.constant 0 : index
    %c0_4 = arith.constant 0 : index
    %5 = vector.load %arg10[%c0_3, %c0_4] : memref<8x32xf32, #tpu.memory_space<vmem>>, vector<8x32xf32>
    %c0_5 = arith.constant 0 : index
    %c0_6 = arith.constant 0 : index
    %6 = vector.load %arg3[%c0_5, %c0_6] : memref<16x50xf32, #tpu.memory_space<vmem>>, vector<16x50xf32>
    %cst = arith.constant dense<0.000000e+00> : vector<8x50xf32>
    %7 = tpu.matmul %4, %6, %cst {dimension_numbers = #tpu.dot_dimension_numbers<[1], [0], [0], [1], [0, 0, 1, 1], [], []>} : vector<8x16xf32>, vector<16x50xf32>, vector<8x50xf32> -> vector<8x50xf32>
    %c0_7 = arith.constant 0 : index
    %c0_8 = arith.constant 0 : index
    %8 = vector.load %arg4[%c0_7, %c0_8] : memref<32x50xf32, #tpu.memory_space<vmem>>, vector<32x50xf32>
    %cst_9 = arith.constant dense<0.000000e+00> : vector<8x50xf32>
    %9 = tpu.matmul %5, %8, %cst_9 {dimension_numbers = #tpu.dot_dimension_numbers<[1], [0], [0], [1], [0, 0, 1, 1], [], []>} : vector<8x32xf32>, vector<32x50xf32>, vector<8x50xf32> -> vector<8x50xf32>
    %10 = arith.addf %7, %9 : vector<8x50xf32>
    %c0_10 = arith.constant 0 : index
    %c0_11 = arith.constant 0 : index
    %11 = vector.load %arg5[%c0_10, %c0_11] : memref<1x50xf32, #tpu.memory_space<vmem>>, vector<1x50xf32>
    %12 = vector.broadcast %11 : vector<1x50xf32> to vector<8x50xf32>
    %13 = arith.addf %10, %12 : vector<8x50xf32>
    %14 = vector.extract_strided_slice %13 {offsets = [0, 0], sizes = [8, 32], strides = [1, 1]} : vector<8x50xf32> to vector<8x32xf32>
    %c0_12 = arith.constant 0 : index
    %c0_13 = arith.constant 0 : index
    %15 = vector.load %arg10[%c0_12, %c0_13] : memref<8x32xf32, #tpu.memory_space<vmem>>, vector<8x32xf32>
    tpu.vector_store %arg10[%c0_12, %c0_13], %14 {strides = array<i32>} : memref<8x32xf32, #tpu.memory_space<vmem>>, vector<8x32xf32>,
    %c0_14 = arith.constant 0 : index
    %c0_15 = arith.constant 0 : index
    %16 = vector.load %arg6[%c0_14, %c0_15] : memref<50x128xf32, #tpu.memory_space<vmem>>, vector<50x128xf32>
    %cst_16 = arith.constant dense<0.000000e+00> : vector<8x128xf32>
    %17 = tpu.matmul %13, %16, %cst_16 {dimension_numbers = #tpu.dot_dimension_numbers<[1], [0], [0], [1], [0, 0, 1, 1], [], []>} : vector<8x50xf32>, vector<50x128xf32>, vector<8x128xf32> -> vector<8x128xf32>
    %c0_17 = arith.constant 0 : index
    %c0_18 = arith.constant 0 : index
    %18 = vector.load %arg7[%c0_17, %c0_18] : memref<1x128xf32, #tpu.memory_space<vmem>>, vector<1x128xf32>
    %19 = vector.broadcast %18 : vector<1x128xf32> to vector<8x128xf32>
    %20 = arith.addf %17, %19 : vector<8x128xf32>
    %cst_19 = arith.constant dense<0xFF800000> : vector<8xf32>
    %21 = vector.multi_reduction <maximumf>, %20, %cst_19 [1] : vector<8x128xf32> to vector<8xf32>
    %22 = vector.shape_cast %21 : vector<8xf32> to vector<8x1xf32>
    %23 = vector.broadcast %22 : vector<8x1xf32> to vector<8x128xf32>
    %24 = arith.subf %20, %23 : vector<8x128xf32>
    %25 = math.exp %24 : vector<8x128xf32>
    %cst_20 = arith.constant dense<0.000000e+00> : vector<8xf32>
    %26 = vector.multi_reduction <add>, %25, %cst_20 [1] : vector<8x128xf32> to vector<8xf32>
    %27 = vector.shape_cast %26 : vector<8xf32> to vector<8x1xf32>
    %28 = math.log %27 : vector<8x1xf32>
    %29 = vector.broadcast %28 : vector<8x1xf32> to vector<8x128xf32>
    %30 = arith.subf %24, %29 : vector<8x128xf32>
    %c0_21 = arith.constant 0 : index
    %c0_22 = arith.constant 0 : index
    %c0_23 = arith.constant 0 : index
    %31 = vector.load %arg8[%c0_21, %c0_22, %c0_23] : memref<1x8x128xf32, #tpu.memory_space<vmem>>, vector<1x8x128xf32>
    %32 = vector.shape_cast %31 : vector<1x8x128xf32> to vector<8x128xf32>
    %33 = vector.shape_cast %30 : vector<8x128xf32> to vector<1x8x128xf32>
    tpu.vector_store %arg8[%c0_21, %c0_22, %c0_23], %33 {strides = array<i32>} : memref<1x8x128xf32, #tpu.memory_space<vmem>>, vector<1x8x128xf32>,
    %c7_i32 = arith.constant 7 : i32
    %34 = arith.cmpi eq, %arg0, %c7_i32 : i32
    %35 = arith.extui %34 : i1 to i32
    %c0_i32_24 = arith.constant 0 : i32
    %36 = arith.cmpi ne, %35, %c0_i32_24 : i32
    scf.if %36 {
      %c0_25 = arith.constant 0 : index
      %c0_26 = arith.constant 0 : index
      %37 = vector.load %arg9[%c0_25, %c0_26] : memref<8x32xf32, #tpu.memory_space<vmem>>, vector<8x32xf32>
      tpu.vector_store %arg9[%c0_25, %c0_26], %14 {strides = array<i32>} : memref<8x32xf32, #tpu.memory_space<vmem>>, vector<8x32xf32>,
    } else {
    }
    return
  }
  func.func @transform_0(%arg0: i32) -> (i32, i32, i32) {
    %c0_i32 = arith.constant 0 : i32
    %c0_i32_0 = arith.constant 0 : i32
    %c0_i32_1 = arith.constant 0 : i32
    return %arg0, %c0_i32, %c0_i32_0 : i32, i32, i32
  }
  func.func @transform_1(%arg0: i32) -> (i32, i32) {
    %c0_i32 = arith.constant 0 : i32
    %c0_i32_0 = arith.constant 0 : i32
    %c0_i32_1 = arith.constant 0 : i32
    return %c0_i32, %c0_i32_0 : i32, i32
  }
  func.func @transform_2(%arg0: i32) -> (i32, i32) {
    %c0_i32 = arith.constant 0 : i32
    %c0_i32_0 = arith.constant 0 : i32
    %c0_i32_1 = arith.constant 0 : i32
    return %c0_i32, %c0_i32_0 : i32, i32
  }
  func.func @transform_3(%arg0: i32) -> (i32, i32) {
    %c0_i32 = arith.constant 0 : i32
    %c0_i32_0 = arith.constant 0 : i32
    %c0_i32_1 = arith.constant 0 : i32
    return %c0_i32, %c0_i32_0 : i32, i32
  }
  func.func @transform_4(%arg0: i32) -> (i32, i32) {
    %c0_i32 = arith.constant 0 : i32
    %c0_i32_0 = arith.constant 0 : i32
    %c0_i32_1 = arith.constant 0 : i32
    return %c0_i32, %c0_i32_0 : i32, i32
  }
  func.func @transform_5(%arg0: i32) -> (i32, i32) {
    %c0_i32 = arith.constant 0 : i32
    %c0_i32_0 = arith.constant 0 : i32
    %c0_i32_1 = arith.constant 0 : i32
    return %c0_i32, %c0_i32_0 : i32, i32
  }
  func.func @transform_6(%arg0: i32) -> (i32, i32) {
    %c0_i32 = arith.constant 0 : i32
    %c0_i32_0 = arith.constant 0 : i32
    %c0_i32_1 = arith.constant 0 : i32
    return %c0_i32, %c0_i32_0 : i32, i32
  }
  func.func @transform_7(%arg0: i32) -> (i32, i32, i32) {
    %c0_i32 = arith.constant 0 : i32
    %c0_i32_0 = arith.constant 0 : i32
    %c0_i32_1 = arith.constant 0 : i32
    return %arg0, %c0_i32, %c0_i32_0 : i32, i32, i32
  }
  func.func @transform_8(%arg0: i32) -> (i32, i32) {
    %c0_i32 = arith.constant 0 : i32
    %c0_i32_0 = arith.constant 0 : i32
    %c0_i32_1 = arith.constant 0 : i32
    return %c0_i32, %c0_i32_0 : i32, i32
  }
}

</mosaic_0001>

<bundles_post_ra>
// kernel: rnn_sequence_forward.1
= control target key start
LH: loop header
LB: loop body
LE: loop exit
PB: predicated region body
PF: predicated region fallthrough
CT: control target
= control target key end

     0   :  { %s795_s27 = smov 0   ;;  %s881_s0 = inlined_call_operand.vmem [shape: f32[8,8,16], index: 0, kind: input, shape index: {}]   ;;  %s882_s1 = inlined_call_operand.vmem [shape: f32[8,32], index: 1, kind: input, shape index: {}]   ;;  %s883_s2 = inlined_call_operand.vmem [shape: f32[16,50], index: 2, kind: input, shape index: {}]   ;;  %s884_s3 = inlined_call_operand.vmem [shape: f32[32,50], index: 3, kind: input, shape index: {}]   ;;  %s885_s4 = inlined_call_operand.vmem [shape: f32[1,50], index: 4, kind: input, shape index: {}]   ;;  %s886_s5 = inlined_call_operand.vmem [shape: f32[50,128], index: 5, kind: input, shape index: {}]   ;;  %s887_s6 = inlined_call_operand.vmem [shape: f32[1,128], index: 6, kind: input, shape index: {}]   ;;  %s888_s7 = inlined_call_operand.vmem [shape: f32[8,8,128], index: 7, kind: output, shape index: {0}]   ;;  %s889_s8 = inlined_call_operand.vmem [shape: f32[8,32], index: 8, kind: output, shape index: {1}]  }
   0x1 LB: > { %s801_s28 = sadd.s32 4294967295, %s745_s27   ;;  %p642_p0 = scmp.ge.s32.totalorder %s745_s27, 1  ;;  %s745_s27 = sphi %s795_s27, %s19_s27  }
   0x2   : > { %p259_p1 = scmp.lt.s32.totalorder %s745_s27, 9 }
   0x4   : > { %p260_p2 = pnand %p642_p0, %p259_p1 }
   0x5   : > { %p291_p3 = scmp.lt.s32.totalorder (!%p260_p2), %s801_s28, 7  ;;  %p645_p4 = scmp.ne.s32.totalorder (!%p260_p2), %s801_s28, 0 }
   0x6   : > { %263 = sbr.rel (%p260_p2) target bundleno = 780 (0x30c), region = 48 }
   0xd   : > { %s292_s29 = scalar_select %p291_p3, %s801_s28, 7 }
   0xe   : > { %302 = sbr.rel (%p645_p4) target bundleno = 21 (0x15), region = 52  ;;  %v303_v0 = vld [vmem:[%s882_s1] sm:$0xff] (!%p645_p4)  ;;  %vm304_vm0 = vcmask (!%p645_p4), 261120  }
   0xf   : > { %s643_s30 = sshll.u32 %s292_s29, 3  ;;  %305 = vst.msk [vmem:[#allocation2] sm:$0xff] (!%p645_p4), %vm304_vm0, %v303_v0 }
  0x10   : > { %s810_s11 = scalar_lea.vmem %s881_s0, %s643_s30  ;;  %s815_s14 = scalar_lea.vmem %s888_s7, %s643_s30 }
  0x15 PF: > { %v310_v1 = vld [vmem:[%s884_s3] sm:$0xff]  ;;  %v311_v2 = vld [vmem:[%s884_s3 + $0x8] sm:$0xff]  ;;  %v312_v3 = vld [vmem:[%s884_s3 + $0x10] sm:$0xff]  ;;  %v747_v4 = vmov 0.0|0.0   ;;  %vm748_vm1 = vmmov 0   ;;  %v749_v7 = vmov 0.0  }
  0x16   : > { %706 = vmatprep.subr.bf16.mxu0 %v747_v4  ;;  %v707_v5 = vpack.c.bf16 %v311_v2, %v310_v1  ;;  %v313_v6 = vld [vmem:[%s884_s3 + $0x18] sm:$0xff]  ;;  %679 = vmatprep.mubr.msk.f32.mxu0 %vm748_vm1, %v749_v7  ;;  %v471_v8 = vld [vmem:[%s886_s5] sm:$0xff]  ;;  %v472_v10 = vld [vmem:[%s886_s5 + $0x8] sm:$0xff]  ;;  %vm314_vm2 = vcmask 261120   ;;  %vm388_vm3 = vcmask 130048   ;;  %vm489_vm4 = vcmask 1041408  }
  0x17   : > { %715 = vmatprep.subr.bf16.mxu1 %v747_v4  ;;  %703 = vmatprep.mubr.msk.f32.mxu1 %vm748_vm1, %v749_v7  ;;  %v710_v9 = vpack.c.bf16 %v313_v6, %v312_v3  ;;  %v308_v11 = vld [vmem:[%s883_s2] sm:$0xff]  ;;  %v309_v12 = vld [vmem:[%s883_s2 + $0x8] sm:$0xff]  ;;  %v716_v13 = vpack.c.bf16 %v472_v10, %v471_v8  ;;  %v473_v17 = vld [vmem:[%s886_s5 + $0x10] sm:$0xff]  ;;  %vm485_vm5 = vcmask 408576   ;;  %p652_p5 = scmp.ne.s32.totalorder %s801_s28, 7 }
  0x18   : > { %708 = vmatpush3.bf16.msra.mxu0 %v707_v5  ;;  %v307_v14 = vld [vmem:[#allocation2] sm:$0xff]  ;;  %v713_v15 = vpack.c.bf16 %v309_v12, %v308_v11  ;;  %v474_v18 = vld [vmem:[%s886_s5 + $0x18] sm:$0xff]  ;;  %v476_v21 = vld [vmem:[%s886_s5 + $0x28] sm:$0xff] }
  0x19   : > { %709 = vmatprep.subr.bf16.mxu0 %v747_v4  ;;  %717 = vmatpush3.bf16.msra.mxu1 %v716_v13  ;;  %v306_v16 = vld [vmem:[%s810_s11] sm:$0xff]  ;;  %v719_v19 = vpack.c.bf16 %v474_v18, %v473_v17  ;;  %v477_v23 = vld [vmem:[%s886_s5 + $0x30] sm:$0x3] }
  0x1a   : > { %718 = vmatprep.subr.bf16.mxu1 %v747_v4  ;;  %v475_v20 = vld [vmem:[%s886_s5 + $0x20] sm:$0xff] }
  0x1b   : > { %v722_v22 = vpack.c.bf16 %v476_v21, %v475_v20  ;;  %v648_v27 = vld [vmem:[%s885_s4] ss:$0 sm:$0xff] }
  0x1c   : > { %711 = vmatpush3.bf16.msra.mxu0 %v710_v9  ;;  %v649_v31 = vld [vmem:[%s887_s6] ss:$0 sm:$0xff] }
  0x1d   : > { %712 = vmatprep.subr.bf16.mxu0 %v747_v4  ;;  %720 = vmatpush3.bf16.msra.mxu1 %v719_v19 }
  0x1e   : > { %721 = vmatprep.subr.bf16.mxu1 %v747_v4 }
  0x1f   : > { %680 = vmatmul.mubr.msk.f32.vlgmr.msra.gmra.mrb[0].mxu0 %vm314_vm2, %v307_v14 }
  0x20   : > { %714 = vmatpush3.bf16.msra.mxu0 %v713_v15  ;;  %686 = vmatprep.mubr.msk.f32.mxu0 %vm748_vm1, %v749_v7 }
  0x21   : > { %723 = vmatpush3.bf16.msra.mxu1 %v722_v22 }
  0x22   : > { %701 = vmatprep.subr.mxu1 %v749_v7 }
  0x23   : > { %687 = vmatmul.mubr.msk.f32.vlgmr.msra.gmra.mrb[2].mxu0 %vm388_vm3, %v306_v16 }
  0x25   : > { %702 = vmatpush3.msk.msra.mxu1 %vm489_vm4, %v477_v23 }
  0xf2   : > { %v384_v24 = vpop.f32.mrb[0].mxu0 }
  0xf3   : > { %v681_v25 = vpop.f32.mrb[1].mxu0 }
  0xf6   : > { %v458_v26 = vpop.f32.mrb[2].mxu0 }
  0xf7   : > { %v459_v28 = vadd.f32 %v458_v26, %v384_v24  ;;  %v688_v29 = vpop.f32.mrb[3].mxu0 }
  0xf9   : > { %v469_v30 = vadd.f32 %v648_v27, %v459_v28 }
  0xfb   : > { %470 = vst.msk [vmem:[#allocation2] sm:$0xff] %vm314_vm2, %v469_v30  ;;  %704 = vmatmul.mubr.msk.f32.vlgmr.msra.gmra.mrb[0].mxu1 %vm485_vm5, %v469_v30  ;;  %578 = vst.msk [vmem:[%s889_s8] sm:$0xff] (!%p652_p5), %vm314_vm2, %v469_v30 }
 0x1ce   : > { %v559_v32 = vpop.f32.mrb[0].mxu1 }
 0x1cf   : > { %v560_v33 = vadd.f32 %v649_v31, %v559_v32  ;;  %v705_v34 = vpop.f32.mrb[1].mxu1 }
 0x1d1   : > { %563 = vmax.xlane.f32.xlu0 %v560_v33 }
 0x25e   : > { %v564_v35 = vpop.xlane.xlu0 %563 }
 0x25f   : > { %v565_v36 = vsub.f32 %v560_v33, %v564_v35 }
 0x261   : > { %v566_v37 = vmul.f32 1.442695, %v565_v36 }
 0x263   : > { %735 = vpow2.f32 %v566_v37 }
 0x26d   : > { %v736_v38 = vpop.eup %735 }
 0x26e   : > { %568 = vadd.xlane.f32.xlu0 %v736_v38 }
 0x2fb   : > { %v569_v39 = vpop.xlane.xlu0 %568 }
 0x2fc   : > { %737 = vlog2.f32 %v569_v39 }
 0x305   : > { %577 = sbr.rel (%p652_p5) target bundleno = 780 (0x30c), region = 56 }
 0x306   : > { %v738_v40 = vpop.eup %737 }
 0x307   : > { %v571_v41 = vmul.f32 0.6931472, %v738_v40 }
 0x309   : > { %v572_v42 = vsub.f32 %v565_v36, %v571_v41 }
 0x30b   : > { %573 = vst [vmem:[%s815_s14] sm:$0xff] %v572_v42 }
 0x30c PF: > { %s19_s27 = sadd.s32 1, %s745_s27  }
 0x30d   : > { %p16_p6 = scmp.ge.s32.totalorder %s19_s27, 10  }
 0x30f   :  { %18 = sbr.rel (!%p16_p6) target bundleno = 1 (0x1), region = 94 }

</bundles_post_ra>
